<compile_context>
chip_gen: v7x
topology: tpu7x:2x2x1
jax: 0.10.0
libtpu: 0.0.40
codegen_flags: <defaults>
</compile_context>

<pallas_src>
import functools

import jax
import jax.numpy as jnp
from jax import lax
from jax.experimental import pallas as pl
from jax.experimental.pallas import tpu as pltpu

LANE = 128


def _num_tensorcores():
    """Best-effort TensorCore count for the leading 'parallel' grid axis."""
    try:
        kind = (jax.devices()[0].device_kind or "").lower()
    except Exception:
        return 1
    # v5e / v6e expose a single TensorCore per chip; v7x has two.
    return 2 if ("v7" in kind or "7x" in kind) else 1


def _accumulate(x_ref, y_ref, acc_ref, *, tile_rows, chunk, base, rows, masked):
    """Accumulate sum((x-y)^2) of the current tile into acc_ref, chunked."""
    n_chunks = tile_rows // chunk

    def body(c, carry):
        off = pl.multiple_of(c * chunk, chunk)
        xd = x_ref[pl.ds(off, chunk), :].astype(jnp.float32)
        yd = y_ref[pl.ds(off, chunk), :].astype(jnp.float32)
        d = xd - yd
        if masked:
            # Cheap (chunk,1) column predicate; broadcast across lanes in where.
            row = base + off + lax.broadcasted_iota(jnp.int32, (chunk, 1), 0)
            d = jnp.where(row < rows, d, 0.0)
        dd = d * d
        if chunk % 8 == 0:
            # Pure VPU: fold the chunk onto the vreg-shaped (8,128) accumulator.
            acc_ref[...] += jnp.sum(dd.reshape(chunk // 8, 8, LANE), axis=0)
        else:
            acc_ref[...] += jnp.sum(dd, axis=0, keepdims=True)
        return carry

    if n_chunks == 1:
        body(0, 0)
    else:
        lax.fori_loop(0, n_chunks, body, 0, unroll=True)


def _msle_partial_kernel(x_ref, y_ref, out_ref, *,
                         rows, tile_rows, chunk, steps_per_par, needs_mask):
    i = pl.program_id(0)   # parallel slice (one per TensorCore on v7x)
    j = pl.program_id(1)   # sequential streaming step within the slice

    @pl.when(j == 0)
    def _():
        out_ref[...] = jnp.zeros_like(out_ref)

    base = (i * steps_per_par + j) * tile_rows
    acc = functools.partial(_accumulate, x_ref, y_ref, out_ref,
                            tile_rows=tile_rows, chunk=chunk,
                            base=base, rows=rows)

    if needs_mask:
        # Fast unmasked path for all full tiles; masked path only runs for the
        # ragged / over-covered final step(s) (pl.when cold path is skipped).
        @pl.when(base + tile_rows <= rows)
        def _():
            acc(masked=False)

        @pl.when(base + tile_rows > rows)
        def _():
            acc(masked=True)
    else:
        acc(masked=False)


def msle_loss(x, y, *, tile_rows=None, chunk_rows=512):
    assert x.shape == y.shape, "x and y must have the same shape"
    total = x.size
    itemsize = jnp.dtype(x.dtype).itemsize

    xf = x.reshape(-1)
    yf = y.reshape(-1)
    rem = total % LANE
    if rem:
        # Only pads the <128-element ragged remainder (zeros contribute 0).
        xf = jnp.pad(xf, (0, LANE - rem))
        yf = jnp.pad(yf, (0, LANE - rem))
    rows = xf.size // LANE
    x2 = xf.reshape(rows, LANE)
    y2 = yf.reshape(rows, LANE)

    # Dtype-aware tile height: keep each pipeline buffer at ~2 MiB per input
    # (4096 rows f32, 8192 rows bf16, 16384 rows int8/fp8).
    if tile_rows is None:
        tile_rows = 4096 * max(1, 4 // itemsize)
    tr = max(8, (tile_rows // 8) * 8)       # sublane-aligned tile height
    if rows <= tr:
        tr = rows                           # single full-extent block
    n_blocks = pl.cdiv(rows, tr)

    # Only split the stream when there are multiple TensorCores (v7x); on
    # single-TC chips the extra axis is just a longer loop + extra masking.
    n_par = max(1, min(_num_tensorcores(), n_blocks))
    spp = pl.cdiv(n_blocks, n_par)          # sequential steps per parallel slice
    over_covered = (n_par * spp != n_blocks)
    needs_mask = (n_par * spp * tr != rows)

    # Row-chunking inside the kernel bounds live VMEM temporaries.
    chunk = chunk_rows if (tr >= chunk_rows and tr % chunk_rows == 0) else tr
    acc_rows = 8 if chunk % 8 == 0 else 1

    if over_covered:
        def in_map(i, j):
            # Clamp so fully-masked over-coverage steps stay in bounds.
            return (jnp.minimum(i * spp + j, n_blocks - 1), 0)
    else:
        def in_map(i, j):
            return (i * spp + j, 0)

    kernel = functools.partial(
        _msle_partial_kernel, rows=rows, tile_rows=tr, chunk=chunk,
        steps_per_par=spp, needs_mask=needs_mask)

    partial = pl.pallas_call(
        kernel,
        out_shape=jax.ShapeDtypeStruct((n_par * acc_rows, LANE), jnp.float32),
        grid_spec=pltpu.PrefetchScalarGridSpec(
            num_scalar_prefetch=0,
            grid=(n_par, spp),
            in_specs=[
                pl.BlockSpec((tr, LANE), in_map),
                pl.BlockSpec((tr, LANE), in_map),
            ],
            # Output block index constant along j -> stays resident; we
            # accumulate directly into it (no VMEM scratch needed).
            out_specs=pl.BlockSpec((acc_rows, LANE), lambda i, j: (i, 0)),
        ),
        compiler_params=pltpu.CompilerParams(
            dimension_semantics=("parallel", "arbitrary"),
            vmem_limit_bytes=32 * 1024 * 1024,
        ),
        cost_estimate=pl.CostEstimate(
            flops=3 * total,
            transcendentals=0,
            bytes_accessed=2 * total * itemsize + n_par * acc_rows * LANE * 4,
        ),
    )(x2, y2)

    # Final tiny reduce + log(mean) outside the kernel.
    # Matches the PyTorch module exactly: log(MSE); returns -inf when x == y.
    return jnp.log(jnp.sum(partial) / jnp.float32(total))


def msle_loss_ref(x, y):
    return jnp.log(jnp.mean((x.astype(jnp.float32) - y.astype(jnp.float32)) ** 2))


if __name__ == "__main__":
    key = jax.random.PRNGKey(0)
    kx, ky = jax.random.split(key)
    shape = (2, 4, 16, 16)  # NCHW-like; the loss is layout-agnostic
    x = jax.random.normal(kx, shape, dtype=jnp.float32)
    y = jax.random.normal(ky, shape, dtype=jnp.float32)

    loss = msle_loss(x, y)
    jax.block_until_ready(loss)

    ref = msle_loss_ref(x, y)
    assert jnp.allclose(loss, ref, atol=1e-5, rtol=1e-5), (loss, ref)
    print("KERNEL_OK")
</pallas_src>

<mosaic_0001>
module attributes {stable_mosaic.version = 11 : i64} {
  func.func @_msle_partial_kernel(%arg0: i32, %arg1: i32, %arg2: memref<16x128xf32, #tpu.memory_space<vmem>>, %arg3: memref<16x128xf32, #tpu.memory_space<vmem>>, %arg4: memref<8x128xf32, #tpu.memory_space<vmem>>) attributes {dimension_semantics = [#tpu.dimension_semantics<parallel>, #tpu.dimension_semantics<arbitrary>], iteration_bounds = array<i64: 1, 1>, scalar_prefetch = 0 : i64, scratch_operands = 0 : i64, tpu.core_type = #tpu.core_type<tc>, window_params = [{transform_indices = @transform_0, window_bounds = array<i64: 16, 128>}, {transform_indices = @transform_1, window_bounds = array<i64: 16, 128>}, {transform_indices = @transform_2, window_bounds = array<i64: 8, 128>}]} {
    %c0_i32 = arith.constant 0 : i32
    %0 = arith.cmpi eq, %arg1, %c0_i32 : i32
    %1 = arith.extui %0 : i1 to i32
    %c0_i32_0 = arith.constant 0 : i32
    %2 = arith.cmpi ne, %1, %c0_i32_0 : i32
    scf.if %2 {
      %cst_7 = arith.constant 0.000000e+00 : f32
      %15 = vector.broadcast %cst_7 : f32 to vector<8x128xf32>
      %c0_8 = arith.constant 0 : index
      %c0_9 = arith.constant 0 : index
      %16 = vector.load %arg4[%c0_8, %c0_9] : memref<8x128xf32, #tpu.memory_space<vmem>>, vector<8x128xf32>
      tpu.vector_store %arg4[%c0_8, %c0_9], %15 {strides = array<i32>} : memref<8x128xf32, #tpu.memory_space<vmem>>, vector<8x128xf32>,
    } else {
    }
    %c0_i32_1 = arith.constant 0 : i32
    %3 = tpu.assume_multiple %c0_i32_1, 16 : i32
    %4 = arith.index_cast %3 : i32 to index
    %c0 = arith.constant 0 : index
    %5 = vector.load %arg2[%4, %c0] : memref<16x128xf32, #tpu.memory_space<vmem>>, vector<16x128xf32>
    %6 = arith.index_cast %3 : i32 to index
    %c0_2 = arith.constant 0 : index
    %7 = vector.load %arg3[%6, %c0_2] : memref<16x128xf32, #tpu.memory_space<vmem>>, vector<16x128xf32>
    %8 = arith.subf %5, %7 : vector<16x128xf32>
    %9 = arith.mulf %8, %8 : vector<16x128xf32>
    %c0_3 = arith.constant 0 : index
    %c0_4 = arith.constant 0 : index
    %10 = vector.load %arg4[%c0_3, %c0_4] : memref<8x128xf32, #tpu.memory_space<vmem>>, vector<8x128xf32>
    %11 = vector.shape_cast %9 : vector<16x128xf32> to vector<2x8x128xf32>
    %cst = arith.constant dense<0.000000e+00> : vector<8x128xf32>
    %12 = vector.multi_reduction <add>, %11, %cst [0] : vector<2x8x128xf32> to vector<8x128xf32>
    %13 = arith.addf %10, %12 : vector<8x128xf32>
    %c0_5 = arith.constant 0 : index
    %c0_6 = arith.constant 0 : index
    %14 = vector.load %arg4[%c0_5, %c0_6] : memref<8x128xf32, #tpu.memory_space<vmem>>, vector<8x128xf32>
    tpu.vector_store %arg4[%c0_5, %c0_6], %13 {strides = array<i32>} : memref<8x128xf32, #tpu.memory_space<vmem>>, vector<8x128xf32>,
    return
  }
  func.func @transform_0(%arg0: i32, %arg1: i32) -> (i32, i32) {
    %c1_i32 = arith.constant 1 : i32
    %0 = arith.muli %arg0, %c1_i32 : i32
    %1 = arith.addi %0, %arg1 : i32
    %c0_i32 = arith.constant 0 : i32
    %c0_i32_0 = arith.constant 0 : i32
    return %1, %c0_i32 : i32, i32
  }
  func.func @transform_1(%arg0: i32, %arg1: i32) -> (i32, i32) {
    %c1_i32 = arith.constant 1 : i32
    %0 = arith.muli %arg0, %c1_i32 : i32
    %1 = arith.addi %0, %arg1 : i32
    %c0_i32 = arith.constant 0 : i32
    %c0_i32_0 = arith.constant 0 : i32
    return %1, %c0_i32 : i32, i32
  }
  func.func @transform_2(%arg0: i32, %arg1: i32) -> (i32, i32) {
    %c0_i32 = arith.constant 0 : i32
    %c0_i32_0 = arith.constant 0 : i32
    return %arg0, %c0_i32 : i32, i32
  }
}

</mosaic_0001>

<bundles_post_ra>
// kernel: tpu_custom_call.1
= control target key start
LH: loop header
LB: loop body
LE: loop exit
PB: predicated region body
PF: predicated region fallthrough
CT: control target
= control target key end

     0   :  { %7 = vsyncpa [#allocation3], 0  ;;  %s219_s0 = inlined_call_operand.hbm [shape: f32[16,128], index: 0, kind: input, shape index: {}]   ;;  %s220_s1 = inlined_call_operand.hbm [shape: f32[16,128], index: 1, kind: input, shape index: {}]   ;;  %s221_s2 = inlined_call_operand.hbm [shape: f32[8,128], index: 2, kind: output, shape index: {}]  }
   0x1   :  { %8 = vsyncpa [#allocation6], 0 }
   0x2   :  { %9 = vsyncpa [#allocation4], 0  ;;  %s163_s9 = smov [#allocation2]   ;;  %s91_s13 = scalar_lea.hbm %s219_s0, 256 }
   0x3   :  { %s19_s10 = sshll.u32 %s163_s9, 4  ;;  %p92_p0 = scmp.ne.s32.totalorder %s219_s0, %s91_s13  ;;  %s20_s10 = int_to_ptr.vmem [resolvable:$true] %s19_s10 }
   0x4   :  { %p95_p1 = scmp.lt.u32.totalorder %s91_s13, %s219_s0 }
   0x6   :  { %p97_p2 = pnand %p95_p1, %p92_p0 }
   0x8   :  { %100 = shalt.err (!%p97_p2)
}
   0x9   :  { %s101_s18 = scalar_lea.vmem %s20_s10, 256  ;;  %p106_p4 = scmp.lt.s32.totalorder %s20_s10, %s20_s10 }
   0xa   :  { %p102_p3 = scmp.ne.s32.totalorder %s20_s10, %s101_s18  ;;  %p107_p5 = scmp.lt.s32.totalorder %s101_s18, %s101_s18 }
   0xc   :  { %p108_p6 = por %p107_p5, %p106_p4 }
   0xe   :  { %p109_p7 = pnand %p108_p6, %p102_p3 }
  0x10   :  { %112 = shalt.err (!%p109_p7)
}
  0x11   :  { %s164_s19 = smov 128   ;;  %s165_s20 = smov 8  }
  0x12   :  { %25 = dma.hbm_to_vmem [thread:$0]  %s219_s0, 256, %s20_s10, [#allocation3], %s164_s19, %s164_s19, %s165_s20  }
  0x13   :  { %s166_s23 = smov [#allocation5]   ;;  %s113_s27 = scalar_lea.hbm %s220_s1, 256 }
  0x14   :  { %s35_s24 = sshll.u32 %s166_s23, 4  ;;  %p114_p8 = scmp.ne.s32.totalorder %s220_s1, %s113_s27  ;;  %s36_s24 = int_to_ptr.vmem [resolvable:$true] %s35_s24 }
  0x15   :  { %p117_p9 = scmp.lt.u32.totalorder %s113_s27, %s220_s1 }
  0x17   :  { %p119_p10 = pnand %p117_p9, %p114_p8 }
  0x19   :  { %122 = shalt.err (!%p119_p10)
}
  0x1a   :  { %s123_s4 = scalar_lea.vmem %s36_s24, 256  ;;  %p128_p12 = scmp.lt.s32.totalorder %s36_s24, %s36_s24 }
  0x1b   :  { %p124_p11 = scmp.ne.s32.totalorder %s36_s24, %s123_s4  ;;  %p129_p13 = scmp.lt.s32.totalorder %s123_s4, %s123_s4 }
  0x1d   :  { %p130_p0 = por %p129_p13, %p128_p12 }
  0x1f   :  { %p131_p1 = pnand %p130_p0, %p124_p11 }
  0x21   :  { %134 = shalt.err (!%p131_p1)
}
  0x22   :  { %41 = dma.hbm_to_vmem [thread:$0]  %s220_s1, 256, %s36_s24, [#allocation6], %s164_s19, %s164_s19, %s165_s20  }
  0x23   :  { %157 = dma.done.wait [#allocation3], 256  }
  0x24   :  { %158 = vsyncadd [#allocation3], 4294967040 }
  0x25   :  { %159 = dma.done.wait [#allocation6], 256  }
  0x26   :  { %160 = vsyncadd [#allocation6], 4294967040  ;;  %v57_v0 = vld [vmem:[#allocation2] sm:$0xff]  ;;  %v58_v1 = vld [vmem:[#allocation2 + $0x8] sm:$0xff]  ;;  %s167_s6 = smov [#allocation7]  }
  0x27   :  { %v59_v2 = vld [vmem:[#allocation5] sm:$0xff]  ;;  %v60_v3 = vld [vmem:[#allocation5 + $0x8] sm:$0xff]  ;;  %s75_s7 = sshll.u32 %s167_s6, 4  ;;  %s76_s7 = int_to_ptr.vmem [resolvable:$true] %s75_s7 }
  0x28   :  { %v61_v4 = vsub.f32 %v57_v0, %v59_v2  ;;  %v62_v5 = vsub.f32 %v58_v1, %v60_v3  ;;  %s135_s8 = scalar_lea.vmem %s76_s7, 128  ;;  %p140_p3 = scmp.lt.s32.totalorder %s76_s7, %s76_s7 }
  0x29   :  { %p136_p2 = scmp.ne.s32.totalorder %s76_s7, %s135_s8  ;;  %p141_p4 = scmp.lt.s32.totalorder %s135_s8, %s135_s8 }
  0x2a   :  { %v63_v6 = vmul.f32 %v61_v4, %v61_v4  ;;  %v64_v7 = vmul.f32 %v62_v5, %v62_v5 }
  0x2b   :  { %p142_p5 = por %p141_p4, %p140_p3 }
  0x2c   :  { %v66_v8 = vadd.f32 %v64_v7, %v63_v6 }
  0x2d   :  { %p143_p6 = pnand %p142_p5, %p136_p2 }
  0x2e   :  { %68 = vst [vmem:[#allocation7] sm:$0xff] %v66_v8 }
  0x2f   :  { %146 = shalt.err (!%p143_p6)
}
  0x30   :  { %s147_s10 = scalar_lea.hbm %s221_s2, 128 }
  0x31   :  { %p148_p7 = scmp.ne.s32.totalorder %s221_s2, %s147_s10  ;;  %p151_p8 = scmp.lt.u32.totalorder %s147_s10, %s221_s2 }
  0x33   :  { %p153_p9 = pnand %p151_p8, %p148_p7 }
  0x35   :  { %156 = shalt.err (!%p153_p9)
}
  0x36   :  { %78 = dma.vmem_to_hbm [thread:$0]  %s76_s7, 128, %s221_s2, [#allocation4]  }
  0x37   :  { %161 = dma.done.wait [#allocation4], 128  }
  0x38   :  { %162 = vsyncadd [#allocation4], 4294967168 }
  0x39   :  { %82 = vsyncpa [#allocation3], 1 }
  0x3a   :  { %83 = vsyncpa [#allocation6], 1 }
  0x3b   :  { %84 = vsyncpa [#allocation4], 1 }

</bundles_post_ra>
